<compile_context>
chip_gen: v5e
topology: v5e:2x2
jax: 0.10.0
libtpu: 0.0.40
codegen_flags: <defaults>
</compile_context>

<pallas_src>
import jax
import jax.numpy as jnp
from jax.experimental import pallas as pl
from jax.experimental.pallas import tpu as pltpu


def asl_mlp_kernel(
    x_ref,
    w1_ref, b1_ref,
    w2_ref, b2_ref,
    w3_ref, b3_ref,
    w4_ref, b4_ref,
    out_ref,
):
    # bf16 operands for the MXU, f32 accumulation / bias / ReLU on the VPU.
    x = x_ref[...].astype(jnp.bfloat16)

    # Layer 1: Linear(63, 64) [BN folded] -> ReLU -> Dropout(eval: identity)
    h = jnp.dot(x, w1_ref[...], preferred_element_type=jnp.float32) + b1_ref[...]
    h = jnp.maximum(h, 0.0)

    # Layer 2: Linear(64, 32) [BN folded] -> ReLU
    h = jnp.dot(h.astype(jnp.bfloat16), w2_ref[...],
                preferred_element_type=jnp.float32) + b2_ref[...]
    h = jnp.maximum(h, 0.0)

    # Layer 3: Linear(32, 16) [BN folded] -> ReLU
    h = jnp.dot(h.astype(jnp.bfloat16), w3_ref[...],
                preferred_element_type=jnp.float32) + b3_ref[...]
    h = jnp.maximum(h, 0.0)

    # Layer 4: Linear(16, 28)
    h = jnp.dot(h.astype(jnp.bfloat16), w4_ref[...],
                preferred_element_type=jnp.float32) + b4_ref[...]

    out_ref[...] = h.astype(out_ref.dtype)


def make_params(key, input_size=63, num_classes=28):
    """Deterministic synthetic parameters matching the PyTorch module shapes."""
    dims = [(input_size, 64), (64, 32), (32, 16), (16, num_classes)]
    ks = jax.random.split(key, 16)
    params = {}
    ki = 0
    for li, (fin, fout) in enumerate(dims, start=1):
        w = jax.random.normal(ks[ki], (fin, fout), jnp.float32) * 0.05
        ki += 1
        b = jax.random.normal(ks[ki], (fout,), jnp.float32) * 0.01
        ki += 1
        params[f"w{li}"] = w
        params[f"b{li}"] = b
    # BatchNorm1d (eval mode) for the first three layers (64, 32, 16 features),
    # expressed as per-feature scale/shift: y = x * scale + shift.
    eps = 1e-5
    for li, f in zip((1, 2, 3), (64, 32, 16)):
        gamma = 1.0 + 0.1 * jax.random.normal(ks[ki], (f,), jnp.float32)
        ki += 1
        beta = 0.05 * jax.random.normal(ks[ki], (f,), jnp.float32)
        ki += 1
        running_mean = 0.1 * jax.random.normal(
            jax.random.fold_in(key, 100 + li), (f,), jnp.float32)
        running_var = 1.0 + 0.1 * jnp.abs(
            jax.random.normal(jax.random.fold_in(key, 200 + li), (f,), jnp.float32))
        scale = gamma / jnp.sqrt(running_var + eps)
        shift = beta - running_mean * scale
        params[f"s{li}"] = scale
        params[f"t{li}"] = shift
    return params


def fold_bn_into_linear(params):
    """Fold eval-mode BN (scale, shift) + linear bias into the weights.

    y = BN(x @ W + b) = (x @ W + b) * s + t = x @ (W * s) + (b * s + t)

    Weights are cast to bf16 once (MXU operands); biases stay f32 (added after
    the f32-accumulated dot).
    """
    folded = {}
    for li in (1, 2, 3):
        w, b = params[f"w{li}"], params[f"b{li}"]
        s, t = params[f"s{li}"], params[f"t{li}"]
        folded[f"w{li}"] = (w * s[None, :]).astype(jnp.bfloat16)
        folded[f"b{li}"] = (b * s + t).astype(jnp.float32)
    folded["w4"] = params["w4"].astype(jnp.bfloat16)
    folded["b4"] = params["b4"].astype(jnp.float32)
    return folded


def asl_classifier_improved(x, params, tile_b=4096):
    """x: [B, 63] float32 -> logits [B, 28] float32 (eval-mode forward)."""
    B, F = x.shape
    num_classes = params["w4"].shape[1]
    folded = fold_bn_into_linear(params)

    # Batch tile: multiple of 8 sublanes, capped at round_up(ceil(B/2), 8) so the
    # "parallel" grid axis has >= 2 steps whenever B > 8 (lets both v7x TCs work).
    half = max(8, ((-(-B // 2) + 7) // 8) * 8)
    tb = max(8, (min(int(tile_b), half) // 8) * 8)
    grid = (pl.cdiv(B, tb),)  # ragged last block: padded reads, masked writes

    def row(v):  # 1D per-feature vector -> [1, F] so it broadcasts over batch
        return v.reshape(1, -1)

    args = (
        x,
        folded["w1"], row(folded["b1"]),
        folded["w2"], row(folded["b2"]),
        folded["w3"], row(folded["b3"]),
        folded["w4"], row(folded["b4"]),
    )

    # x / out are tiled over the batch; weights & biases stay resident
    # (constant index map -> fetched once, re-used every grid step).
    x_spec = pl.BlockSpec((tb, F), lambda i: (i, 0))
    out_spec = pl.BlockSpec((tb, num_classes), lambda i: (i, 0))
    param_specs = [pl.BlockSpec(a.shape, lambda i: (0, 0)) for a in args[1:]]
    in_specs = [x_spec] + param_specs

    flops = 2 * B * (63 * 64 + 64 * 32 + 32 * 16 + 16 * num_classes)
    param_bytes = sum(int(a.size) * a.dtype.itemsize for a in args[1:])
    bytes_accessed = B * (F + num_classes) * 4 + param_bytes
    cost = pl.CostEstimate(flops=flops, transcendentals=0,
                           bytes_accessed=bytes_accessed)

    return pl.pallas_call(
        asl_mlp_kernel,
        out_shape=jax.ShapeDtypeStruct((B, num_classes), jnp.float32),
        grid=grid,
        in_specs=in_specs,
        out_specs=out_spec,
        compiler_params=pltpu.CompilerParams(
            dimension_semantics=("parallel",),
            vmem_limit_bytes=32 * 1024 * 1024,
        ),
        cost_estimate=cost,
    )(*args)


def reference_forward(x, params):
    """Pure-JAX f32 reference (eval-mode semantics) for verification."""
    h = x @ params["w1"] + params["b1"]
    h = h * params["s1"] + params["t1"]
    h = jnp.maximum(h, 0.0)
    h = h @ params["w2"] + params["b2"]
    h = h * params["s2"] + params["t2"]
    h = jnp.maximum(h, 0.0)
    h = h @ params["w3"] + params["b3"]
    h = h * params["s3"] + params["t3"]
    h = jnp.maximum(h, 0.0)
    return h @ params["w4"] + params["b4"]


if __name__ == "__main__":
    key = jax.random.PRNGKey(0)
    k_x, k_x2, k_p = jax.random.split(key, 3)
    params = make_params(k_p)

    # Small-shape check (B=8, input_size=63: 21 hand landmarks x 3 coords).
    # bf16 matmul inputs -> loosened tolerance vs f32 reference.
    B, F = 8, 63
    x = jax.random.normal(k_x, (B, F), jnp.float32)
    out = jax.block_until_ready(asl_classifier_improved(x, params))
    ref = reference_forward(x, params)
    assert out.shape == (B, 28), out.shape
    assert jnp.allclose(out, ref, atol=3e-2, rtol=3e-2), \
        float(jnp.max(jnp.abs(out - ref)))

    # Multi-tile grid + ragged last block (B=300 with tile 128 -> blocks 128/128/44).
    B2 = 300
    x2 = jax.random.normal(k_x2, (B2, F), jnp.float32)
    out2 = jax.block_until_ready(asl_classifier_improved(x2, params, tile_b=128))
    ref2 = reference_forward(x2, params)
    assert out2.shape == (B2, 28), out2.shape
    assert jnp.allclose(out2, ref2, atol=3e-2, rtol=3e-2), \
        float(jnp.max(jnp.abs(out2 - ref2)))

    print("KERNEL_OK")
</pallas_src>

<mosaic_0001>
module attributes {stable_mosaic.version = 11 : i64} {
  func.func @asl_mlp_kernel(%arg0: i32, %arg1: memref<8x63xf32, #tpu.memory_space<vmem>>, %arg2: memref<63x64xbf16, #tpu.memory_space<vmem>>, %arg3: memref<1x64xf32, #tpu.memory_space<vmem>>, %arg4: memref<64x32xbf16, #tpu.memory_space<vmem>>, %arg5: memref<1x32xf32, #tpu.memory_space<vmem>>, %arg6: memref<32x16xbf16, #tpu.memory_space<vmem>>, %arg7: memref<1x16xf32, #tpu.memory_space<vmem>>, %arg8: memref<16x28xbf16, #tpu.memory_space<vmem>>, %arg9: memref<1x28xf32, #tpu.memory_space<vmem>>, %arg10: memref<8x28xf32, #tpu.memory_space<vmem>>) attributes {dimension_semantics = [#tpu.dimension_semantics<parallel>], iteration_bounds = array<i64: 1>, scalar_prefetch = 0 : i64, scratch_operands = 0 : i64, tpu.core_type = #tpu.core_type<tc>, window_params = [{transform_indices = @transform_0, window_bounds = array<i64: 8, 63>}, {pipeline_mode = #tpu.pipeline_mode<synchronous>, transform_indices = @transform_1, window_bounds = array<i64: 63, 64>}, {pipeline_mode = #tpu.pipeline_mode<synchronous>, transform_indices = @transform_2, window_bounds = array<i64: 1, 64>}, {pipeline_mode = #tpu.pipeline_mode<synchronous>, transform_indices = @transform_3, window_bounds = array<i64: 64, 32>}, {pipeline_mode = #tpu.pipeline_mode<synchronous>, transform_indices = @transform_4, window_bounds = array<i64: 1, 32>}, {pipeline_mode = #tpu.pipeline_mode<synchronous>, transform_indices = @transform_5, window_bounds = array<i64: 32, 16>}, {pipeline_mode = #tpu.pipeline_mode<synchronous>, transform_indices = @transform_6, window_bounds = array<i64: 1, 16>}, {pipeline_mode = #tpu.pipeline_mode<synchronous>, transform_indices = @transform_7, window_bounds = array<i64: 16, 28>}, {pipeline_mode = #tpu.pipeline_mode<synchronous>, transform_indices = @transform_8, window_bounds = array<i64: 1, 28>}, {transform_indices = @transform_9, window_bounds = array<i64: 8, 28>}]} {
    %c0 = arith.constant 0 : index
    %c0_0 = arith.constant 0 : index
    %0 = vector.load %arg1[%c0, %c0_0] : memref<8x63xf32, #tpu.memory_space<vmem>>, vector<8x63xf32>
    %1 = arith.truncf %0 : vector<8x63xf32> to vector<8x63xbf16>
    %c0_1 = arith.constant 0 : index
    %c0_2 = arith.constant 0 : index
    %2 = vector.load %arg2[%c0_1, %c0_2] : memref<63x64xbf16, #tpu.memory_space<vmem>>, vector<63x64xbf16>
    %cst = arith.constant dense<0.000000e+00> : vector<8x64xf32>
    %3 = tpu.matmul %1, %2, %cst {dimension_numbers = #tpu.dot_dimension_numbers<[1], [0], [0], [1], [0, 0, 1, 1], [], []>} : vector<8x63xbf16>, vector<63x64xbf16>, vector<8x64xf32> -> vector<8x64xf32>
    %c0_3 = arith.constant 0 : index
    %c0_4 = arith.constant 0 : index
    %4 = vector.load %arg3[%c0_3, %c0_4] : memref<1x64xf32, #tpu.memory_space<vmem>>, vector<1x64xf32>
    %5 = vector.broadcast %4 : vector<1x64xf32> to vector<8x64xf32>
    %6 = arith.addf %3, %5 : vector<8x64xf32>
    %cst_5 = arith.constant 0.000000e+00 : f32
    %7 = vector.broadcast %cst_5 : f32 to vector<8x64xf32>
    %8 = arith.maximumf %6, %7 : vector<8x64xf32>
    %9 = arith.truncf %8 : vector<8x64xf32> to vector<8x64xbf16>
    %c0_6 = arith.constant 0 : index
    %c0_7 = arith.constant 0 : index
    %10 = vector.load %arg4[%c0_6, %c0_7] : memref<64x32xbf16, #tpu.memory_space<vmem>>, vector<64x32xbf16>
    %cst_8 = arith.constant dense<0.000000e+00> : vector<8x32xf32>
    %11 = tpu.matmul %9, %10, %cst_8 {dimension_numbers = #tpu.dot_dimension_numbers<[1], [0], [0], [1], [0, 0, 1, 1], [], []>} : vector<8x64xbf16>, vector<64x32xbf16>, vector<8x32xf32> -> vector<8x32xf32>
    %c0_9 = arith.constant 0 : index
    %c0_10 = arith.constant 0 : index
    %12 = vector.load %arg5[%c0_9, %c0_10] : memref<1x32xf32, #tpu.memory_space<vmem>>, vector<1x32xf32>
    %13 = vector.broadcast %12 : vector<1x32xf32> to vector<8x32xf32>
    %14 = arith.addf %11, %13 : vector<8x32xf32>
    %cst_11 = arith.constant 0.000000e+00 : f32
    %15 = vector.broadcast %cst_11 : f32 to vector<8x32xf32>
    %16 = arith.maximumf %14, %15 : vector<8x32xf32>
    %17 = arith.truncf %16 : vector<8x32xf32> to vector<8x32xbf16>
    %c0_12 = arith.constant 0 : index
    %c0_13 = arith.constant 0 : index
    %18 = vector.load %arg6[%c0_12, %c0_13] : memref<32x16xbf16, #tpu.memory_space<vmem>>, vector<32x16xbf16>
    %cst_14 = arith.constant dense<0.000000e+00> : vector<8x16xf32>
    %19 = tpu.matmul %17, %18, %cst_14 {dimension_numbers = #tpu.dot_dimension_numbers<[1], [0], [0], [1], [0, 0, 1, 1], [], []>} : vector<8x32xbf16>, vector<32x16xbf16>, vector<8x16xf32> -> vector<8x16xf32>
    %c0_15 = arith.constant 0 : index
    %c0_16 = arith.constant 0 : index
    %20 = vector.load %arg7[%c0_15, %c0_16] : memref<1x16xf32, #tpu.memory_space<vmem>>, vector<1x16xf32>
    %21 = vector.broadcast %20 : vector<1x16xf32> to vector<8x16xf32>
    %22 = arith.addf %19, %21 : vector<8x16xf32>
    %cst_17 = arith.constant 0.000000e+00 : f32
    %23 = vector.broadcast %cst_17 : f32 to vector<8x16xf32>
    %24 = arith.maximumf %22, %23 : vector<8x16xf32>
    %25 = arith.truncf %24 : vector<8x16xf32> to vector<8x16xbf16>
    %c0_18 = arith.constant 0 : index
    %c0_19 = arith.constant 0 : index
    %26 = vector.load %arg8[%c0_18, %c0_19] : memref<16x28xbf16, #tpu.memory_space<vmem>>, vector<16x28xbf16>
    %cst_20 = arith.constant dense<0.000000e+00> : vector<8x28xf32>
    %27 = tpu.matmul %25, %26, %cst_20 {dimension_numbers = #tpu.dot_dimension_numbers<[1], [0], [0], [1], [0, 0, 1, 1], [], []>} : vector<8x16xbf16>, vector<16x28xbf16>, vector<8x28xf32> -> vector<8x28xf32>
    %c0_21 = arith.constant 0 : index
    %c0_22 = arith.constant 0 : index
    %28 = vector.load %arg9[%c0_21, %c0_22] : memref<1x28xf32, #tpu.memory_space<vmem>>, vector<1x28xf32>
    %29 = vector.broadcast %28 : vector<1x28xf32> to vector<8x28xf32>
    %30 = arith.addf %27, %29 : vector<8x28xf32>
    %c0_23 = arith.constant 0 : index
    %c0_24 = arith.constant 0 : index
    %31 = vector.load %arg10[%c0_23, %c0_24] : memref<8x28xf32, #tpu.memory_space<vmem>>, vector<8x28xf32>
    tpu.vector_store %arg10[%c0_23, %c0_24], %30 {strides = array<i32>} : memref<8x28xf32, #tpu.memory_space<vmem>>, vector<8x28xf32>,
    return
  }
  func.func @transform_0(%arg0: i32) -> (i32, i32) {
    %c0_i32 = arith.constant 0 : i32
    %c0_i32_0 = arith.constant 0 : i32
    return %arg0, %c0_i32 : i32, i32
  }
  func.func @transform_1(%arg0: i32) -> (i32, i32) {
    %c0_i32 = arith.constant 0 : i32
    %c0_i32_0 = arith.constant 0 : i32
    %c0_i32_1 = arith.constant 0 : i32
    return %c0_i32, %c0_i32_0 : i32, i32
  }
  func.func @transform_2(%arg0: i32) -> (i32, i32) {
    %c0_i32 = arith.constant 0 : i32
    %c0_i32_0 = arith.constant 0 : i32
    %c0_i32_1 = arith.constant 0 : i32
    return %c0_i32, %c0_i32_0 : i32, i32
  }
  func.func @transform_3(%arg0: i32) -> (i32, i32) {
    %c0_i32 = arith.constant 0 : i32
    %c0_i32_0 = arith.constant 0 : i32
    %c0_i32_1 = arith.constant 0 : i32
    return %c0_i32, %c0_i32_0 : i32, i32
  }
  func.func @transform_4(%arg0: i32) -> (i32, i32) {
    %c0_i32 = arith.constant 0 : i32
    %c0_i32_0 = arith.constant 0 : i32
    %c0_i32_1 = arith.constant 0 : i32
    return %c0_i32, %c0_i32_0 : i32, i32
  }
  func.func @transform_5(%arg0: i32) -> (i32, i32) {
    %c0_i32 = arith.constant 0 : i32
    %c0_i32_0 = arith.constant 0 : i32
    %c0_i32_1 = arith.constant 0 : i32
    return %c0_i32, %c0_i32_0 : i32, i32
  }
  func.func @transform_6(%arg0: i32) -> (i32, i32) {
    %c0_i32 = arith.constant 0 : i32
    %c0_i32_0 = arith.constant 0 : i32
    %c0_i32_1 = arith.constant 0 : i32
    return %c0_i32, %c0_i32_0 : i32, i32
  }
  func.func @transform_7(%arg0: i32) -> (i32, i32) {
    %c0_i32 = arith.constant 0 : i32
    %c0_i32_0 = arith.constant 0 : i32
    %c0_i32_1 = arith.constant 0 : i32
    return %c0_i32, %c0_i32_0 : i32, i32
  }
  func.func @transform_8(%arg0: i32) -> (i32, i32) {
    %c0_i32 = arith.constant 0 : i32
    %c0_i32_0 = arith.constant 0 : i32
    %c0_i32_1 = arith.constant 0 : i32
    return %c0_i32, %c0_i32_0 : i32, i32
  }
  func.func @transform_9(%arg0: i32) -> (i32, i32) {
    %c0_i32 = arith.constant 0 : i32
    %c0_i32_0 = arith.constant 0 : i32
    return %arg0, %c0_i32 : i32, i32
  }
}

</mosaic_0001>

<bundles_post_ra>
// kernel: tpu_custom_call.1
= control target key start
LH: loop header
LB: loop body
LE: loop exit
PB: predicated region body
PF: predicated region fallthrough
CT: control target
= control target key end

     0   :  { %vm75_vm0 = vcmask 1046528   ;;  %vm76_vm1 = vcmask 1047552   ;;  %v329_v1 = vmov 65535   ;;  %s432_s0 = inlined_call_operand.vmem [shape: f32[8,63], index: 0, kind: input, shape index: {}]   ;;  %s433_s1 = inlined_call_operand.vmem [shape: bf16[63,64], index: 1, kind: input, shape index: {}]   ;;  %s434_s2 = inlined_call_operand.vmem [shape: f32[1,64], index: 2, kind: input, shape index: {}]   ;;  %s435_s3 = inlined_call_operand.vmem [shape: bf16[64,32], index: 3, kind: input, shape index: {}]   ;;  %s436_s4 = inlined_call_operand.vmem [shape: f32[1,32], index: 4, kind: input, shape index: {}]   ;;  %s437_s5 = inlined_call_operand.vmem [shape: bf16[32,16], index: 5, kind: input, shape index: {}]   ;;  %s438_s6 = inlined_call_operand.vmem [shape: f32[1,16], index: 6, kind: input, shape index: {}]   ;;  %s439_s7 = inlined_call_operand.vmem [shape: bf16[16,28], index: 7, kind: input, shape index: {}]   ;;  %s440_s8 = inlined_call_operand.vmem [shape: f32[1,28], index: 8, kind: input, shape index: {}]   ;;  %s441_s9 = inlined_call_operand.hbm [shape: f32[8,28], index: 9, kind: output, shape index: {}]  }
   0x1   :  { %v289_v0 = vld [vmem:[%s433_s1 + $0x18] sm:$0xff]  ;;  %v77_v2 = vsel %vm75_vm0, 4294967295, %v329_v1  ;;  %v292_v5 = vld [vmem:[%s435_s3 + $0x10] sm:$0xff] }
   0x2   :  { %v293_v3 = vld [vmem:[%s435_s3 + $0x18] sm:$0xff]  ;;  %v78_v4 = vsel %vm76_vm1, %v77_v2, 0 }
   0x3   :  { %v80_v6 = vand.u32 %v289_v0, %v78_v4  ;;  %141 = vmatpush.bf16.msra.mxu1 %v293_v3 }
   0x4   :  { %14 = vsyncpa [#allocation3], 0  ;;  %v288_v7 = vld [vmem:[%s433_s1 + $0x10] sm:$0xff]  ;;  %v287_v8 = vld [vmem:[%s433_s1 + $0x8] sm:$0xff]  ;;  %vm71_vm2 = vcmask 515072   ;;  %vm133_vm3 = vcmask 523264  }
   0x5   :  { %86 = vmatpush.bf16.msra.mxu0 %v80_v6  ;;  %v286_v9 = vld [vmem:[%s433_s1] sm:$0xff]  ;;  %v291_v12 = vld [vmem:[%s435_s3 + $0x8] sm:$0xff]  ;;  %vm172_vm4 = vcmask 261120   ;;  %vm203_vm5 = vcmask 130048   ;;  %s330_s14 = smov [#allocation2]   ;;  %s229_s17 = sshll.u32 %s441_s9, 4  ;;  %s230_s17 = int_to_ptr.hbm [resolvable:$true] %s229_s17 }
   0x6   :  { %v34_v10 = vld [vmem:[%s432_s0] sm:$0xff]  ;;  %v295_v20 = vld [vmem:[%s437_s5 + $0x8] sm:$0xff]  ;;  %s227_s15 = sshll.u32 %s330_s14, 4  ;;  %vm220_vm6 = vcmask 228352   ;;  %s228_s15 = int_to_ptr.vmem [resolvable:$true] %s227_s15 }
   0x7   :  { %142 = vmatpush.bf16.msra.mxu1 %v292_v5  ;;  %v35_v11 = vpack.c.bf16 %v34_v10, %v34_v10  ;;  %v290_v13 = vld [vmem:[%s435_s3] sm:$0xff]  ;;  %182 = vmatpush.bf16.msra.mxu2 %v295_v20 }
   0x8   :  { %v299_v14 = vld [vmem:[%s434_s2] ss:$0 sm:$0xff] }
   0x9   :  { %87 = vmatpush.bf16.msra.mxu0 %v288_v7  ;;  %v294_v21 = vld [vmem:[%s437_s5] sm:$0xff] }
   0xa   :  { %v300_v22 = vld [vmem:[%s436_s4] ss:$0 sm:$0xff] }
   0xb   :  { %143 = vmatpush.bf16.msra.mxu1 %v291_v12  ;;  %183 = vmatpush.bf16.msra.mxu2 %v294_v21  ;;  %v296_v28 = vld [vmem:[%s439_s7] sm:$0xff] }
   0xc   :  { %214 = vmatpush.bf16.msra.mxu3 %v296_v28  ;;  %v301_v29 = vld [vmem:[%s438_s6] ss:$0 sm:$0xff] }
   0xd   :  { %88 = vmatpush.bf16.msra.mxu0 %v287_v8  ;;  %v302_v35 = vld [vmem:[%s440_s8] ss:$0 sm:$0xff] }
   0xf   :  { %144 = vmatpush.bf16.msra.mxu1 %v290_v13 }
  0x11   :  { %89 = vmatpush.bf16.msra.mxu0 %v286_v9 }
  0x14   :  { %254 = vmatmul.msk.bf16.vlgmr.msra.gmra.mxu0 %vm71_vm2, %v35_v11 }
  0x91   :  { %v91_v15 = vpop.f32.mrf.mxu0 }
  0x92   :  { %v92_v16 = vadd.f32 %v299_v14, %v91_v15 }
  0x94   :  { %v95_v17 = vmax.f32 %v92_v16, 0.0 }
  0x96   :  { %v96_v18 = vpack.c.bf16 %v95_v17, %v95_v17 }
  0x98   :  { %271 = vmatmul.msk.bf16.vlgmr.msra.gmra.mxu1 %vm133_vm3, %v96_v18 }
  0x99   :  { %v93_v19 = vpop.f32.mrf.mxu0 }
 0x115   :  { %v146_v23 = vpop.f32.mrf.mxu1 }
 0x116   :  { %v147_v24 = vadd.f32 %v300_v22, %v146_v23 }
 0x118   :  { %v150_v25 = vmax.f32 %v147_v24, 0.0 }
 0x11a   :  { %v151_v26 = vpack.c.bf16 %v150_v25, %v150_v25 }
 0x11c   :  { %280 = vmatmul.msk.bf16.vlgmr.msra.gmra.mxu2 %vm172_vm4, %v151_v26 }
 0x11d   :  { %v148_v27 = vpop.f32.mrf.mxu1 }
 0x19f   :  { %v185_v30 = vpop.f32.mrf.mxu2 }
 0x1a0   :  { %v186_v31 = vadd.f32 %v301_v29, %v185_v30 }
 0x1a2   :  { %v189_v32 = vmax.f32 %v186_v31, 0.0 }
 0x1a4   :  { %v190_v33 = vpack.c.bf16 %v189_v32, %v189_v32 }
 0x1a6   :  { %285 = vmatmul.msk.bf16.vlgmr.msra.gmra.mxu3 %vm203_vm5, %v190_v33 }
 0x1a7   :  { %v187_v34 = vpop.f32.mrf.mxu2 }
 0x229   :  { %v216_v36 = vpop.f32.mrf.mxu3 }
 0x22a   :  { %v217_v37 = vadd.f32 %v302_v35, %v216_v36 }
 0x22c   :  { %221 = vst.msk [vmem:[#allocation2] sm:$0xff] %vm220_vm6, %v217_v37 }
 0x22d   :  { %232 = dma.vmem_to_hbm [thread:$0]  %s228_s15, 128, %s230_s17, [#allocation3]  }
 0x231   :  { %v218_v38 = vpop.f32.mrf.mxu3 }
 0x232   :  { %327 = dma.done.wait [#allocation3], 128  }
 0x233   :  { %328 = vsyncadd [#allocation3], 4294967168 }
 0x234   :  { %237 = vsyncpa [#allocation3], 1 }

</bundles_post_ra>
